<compile_context>
chip_gen: v7x
topology: tpu7x:2x2x1
jax: 0.10.0
libtpu: 0.0.40
codegen_flags: <defaults>
</compile_context>

<pallas_src>
import functools

import jax
import jax.numpy as jnp
from jax.experimental import pallas as pl
from jax.experimental.pallas import tpu as pltpu

_LANE = 128
_SUBLANE = 8


def _round_up(v, m):
    return ((v + m - 1) // m) * m


def _pad_last(a, to):
    pad = to - a.shape[-1]
    return a if pad <= 0 else jnp.pad(a, [(0, 0)] * (a.ndim - 1) + [(0, pad)])


def _mlp_kernel(x_ref, w1_ref, b1_ref, w2_ref, b2_ref, o_ref):
    """Fused Linear -> ReLU -> Linear on one row tile, everything in VMEM."""
    x = x_ref[...]
    h = jnp.dot(x, w1_ref[...], preferred_element_type=jnp.float32) + b1_ref[...]
    h = jnp.maximum(h, 0.0)                      # ReLU; zero-padded lanes stay exactly 0
    o = jnp.dot(h, w2_ref[...], preferred_element_type=jnp.float32) + b2_ref[...]
    o_ref[...] = o.astype(o_ref.dtype)


def prepare_params(w1, b1, w2, b2):
    """One-time parameter prep (hoisted out of the per-step forward).

    * embed_dim zero-padded to 128 -> lane-dense intermediate h tile.
    * out_dim zero-padded to 8 only -> narrow HBM output slab (low writeback traffic).
    * x's feature dim is untouched.
    Padded columns/rows are zero, and ReLU(0) = 0, so results are bit-identical
    on the real output columns.
    """
    input_dim, embed_dim = w1.shape
    out_dim = w2.shape[-1]
    embed_pad = _round_up(embed_dim, _LANE)
    out_pad = _round_up(out_dim, _SUBLANE)
    w1p = _pad_last(w1, embed_pad)                                            # [in, 128]
    b1p = _pad_last(b1.reshape(1, embed_dim), embed_pad)                      # [1, 128]
    w2p = jnp.pad(w2, ((0, embed_pad - embed_dim), (0, out_pad - out_dim)))   # [128, 8]
    b2p = _pad_last(b2.reshape(1, out_dim), out_pad)                          # [1, 8]
    return w1p, b1p, w2p, b2p


def binary_classifier_forward(x, w1p, b1p, w2p, b2p, *, out_dim=2,
                              block_b=2048, small_block=256):
    """x: [B, input_dim] (f32); padded params from prepare_params. Returns [B, out_dim]."""
    B, input_dim = x.shape
    embed_pad = w1p.shape[1]
    out_pad = w2p.shape[1]

    if B <= small_block:
        # Tiny working set: no grid, no pipeline bookkeeping — whole arrays in VMEM.
        out = pl.pallas_call(
            _mlp_kernel,
            out_shape=jax.ShapeDtypeStruct((B, out_pad), x.dtype),
            in_specs=[pl.BlockSpec(memory_space=pltpu.MemorySpace.VMEM)] * 5,
            out_specs=pl.BlockSpec(memory_space=pltpu.MemorySpace.VMEM),
        )(x, w1p, b1p, w2p, b2p)
        return out[:, :out_dim]

    # Row-tiled path: ragged last tile handled by Pallas (no jnp.pad of x, no row
    # slice afterwards).  Guarantee >= 2 grid steps so v7x's two TensorCores both
    # get work on the "parallel" batch axis; tb is kept a multiple of 8 (sublane).
    tb = min(block_b, _round_up(pl.cdiv(B, 2), _SUBLANE))
    tb = max(tb, _SUBLANE)
    grid = (pl.cdiv(B, tb),)

    out = pl.pallas_call(
        _mlp_kernel,
        out_shape=jax.ShapeDtypeStruct((B, out_pad), x.dtype),
        grid=grid,
        in_specs=[
            pl.BlockSpec((tb, input_dim), lambda i: (i, 0)),         # streamed row tiles
            pl.BlockSpec((input_dim, embed_pad), lambda i: (0, 0)),  # resident weights
            pl.BlockSpec((1, embed_pad), lambda i: (0, 0)),
            pl.BlockSpec((embed_pad, out_pad), lambda i: (0, 0)),
            pl.BlockSpec((1, out_pad), lambda i: (0, 0)),
        ],
        out_specs=pl.BlockSpec((tb, out_pad), lambda i: (i, 0)),
        compiler_params=pltpu.CompilerParams(
            # Batch tiles are independent -> shard across TensorCores on v7x.
            dimension_semantics=("parallel",),
        ),
    )(x, w1p, b1p, w2p, b2p)
    # Narrow (B, 8) -> (B, 2) slice; tiny compared to the streamed x read.
    return out[:, :out_dim]


if __name__ == "__main__":
    # Hyperparameters implied by the module's __init__:
    task_rep_dim = 16
    rnn_hidden_dim = 32
    input_dim = task_rep_dim * 2      # 32
    embed_dim = rnn_hidden_dim        # 32
    out_dim = 2

    key = jax.random.PRNGKey(0)
    kx, k1, kb1, k2, kb2, kx2 = jax.random.split(key, 6)

    # Deterministic synthetic parameters (nn.Linear [out, in] stored transposed).
    w1 = jax.random.normal(k1, (input_dim, embed_dim), dtype=jnp.float32) * 0.1
    b1 = jax.random.normal(kb1, (embed_dim,), dtype=jnp.float32) * 0.1
    w2 = jax.random.normal(k2, (embed_dim, out_dim), dtype=jnp.float32) * 0.1
    b2 = jax.random.normal(kb2, (out_dim,), dtype=jnp.float32) * 0.1

    # One-time parameter prep (hoisted out of the forward).
    w1p, b1p, w2p, b2p = prepare_params(w1, b1, w2, b2)

    def reference_forward(xx):
        h = jnp.maximum(xx @ w1 + b1[None, :], 0.0)
        return h @ w2 + b2[None, :]

    # 1) Small-batch (no-grid, VMEM-resident) path.
    batch = 8
    x = jax.random.normal(kx, (batch, input_dim), dtype=jnp.float32)
    fwd_small = jax.jit(functools.partial(binary_classifier_forward, out_dim=out_dim))
    pred = jax.block_until_ready(fwd_small(x, w1p, b1p, w2p, b2p))
    ref = reference_forward(x)
    assert pred.shape == (batch, out_dim)
    assert jnp.allclose(pred, ref, atol=1e-5, rtol=1e-5), "small-path mismatch"

    # 2) Row-tiled "parallel" path: ragged last tile (24 rows, tile 8 -> 3 steps).
    big_b = 24
    xb = jax.random.normal(kx2, (big_b, input_dim), dtype=jnp.float32)
    fwd_tiled = jax.jit(functools.partial(binary_classifier_forward, out_dim=out_dim,
                                          block_b=8, small_block=4))
    pred_t = jax.block_until_ready(fwd_tiled(xb, w1p, b1p, w2p, b2p))
    ref_t = reference_forward(xb)
    assert pred_t.shape == (big_b, out_dim)
    assert jnp.allclose(pred_t, ref_t, atol=1e-5, rtol=1e-5), "tiled-path mismatch"

    print("KERNEL_OK")
</pallas_src>

<mosaic_0001>
module attributes {stable_mosaic.version = 11 : i64} {
  func.func @_mlp_kernel(%arg0: memref<8x32xf32, #tpu.memory_space<vmem>>, %arg1: memref<32x128xf32, #tpu.memory_space<vmem>>, %arg2: memref<1x128xf32, #tpu.memory_space<vmem>>, %arg3: memref<128x8xf32, #tpu.memory_space<vmem>>, %arg4: memref<1x8xf32, #tpu.memory_space<vmem>>, %arg5: memref<8x8xf32, #tpu.memory_space<vmem>>) attributes {dimension_semantics = [], scalar_prefetch = 0 : i64, scratch_operands = 0 : i64, tpu.core_type = #tpu.core_type<tc>} {
    %c0 = arith.constant 0 : index
    %c0_0 = arith.constant 0 : index
    %0 = vector.load %arg0[%c0, %c0_0] : memref<8x32xf32, #tpu.memory_space<vmem>>, vector<8x32xf32>
    %c0_1 = arith.constant 0 : index
    %c0_2 = arith.constant 0 : index
    %1 = vector.load %arg1[%c0_1, %c0_2] : memref<32x128xf32, #tpu.memory_space<vmem>>, vector<32x128xf32>
    %cst = arith.constant dense<0.000000e+00> : vector<8x128xf32>
    %2 = tpu.matmul %0, %1, %cst {dimension_numbers = #tpu.dot_dimension_numbers<[1], [0], [0], [1], [0, 0, 1, 1], [], []>} : vector<8x32xf32>, vector<32x128xf32>, vector<8x128xf32> -> vector<8x128xf32>
    %c0_3 = arith.constant 0 : index
    %c0_4 = arith.constant 0 : index
    %3 = vector.load %arg2[%c0_3, %c0_4] : memref<1x128xf32, #tpu.memory_space<vmem>>, vector<1x128xf32>
    %4 = vector.broadcast %3 : vector<1x128xf32> to vector<8x128xf32>
    %5 = arith.addf %2, %4 : vector<8x128xf32>
    %cst_5 = arith.constant 0.000000e+00 : f32
    %6 = vector.broadcast %cst_5 : f32 to vector<8x128xf32>
    %7 = arith.maximumf %5, %6 : vector<8x128xf32>
    %c0_6 = arith.constant 0 : index
    %c0_7 = arith.constant 0 : index
    %8 = vector.load %arg3[%c0_6, %c0_7] : memref<128x8xf32, #tpu.memory_space<vmem>>, vector<128x8xf32>
    %cst_8 = arith.constant dense<0.000000e+00> : vector<8x8xf32>
    %9 = tpu.matmul %7, %8, %cst_8 {dimension_numbers = #tpu.dot_dimension_numbers<[1], [0], [0], [1], [0, 0, 1, 1], [], []>} : vector<8x128xf32>, vector<128x8xf32>, vector<8x8xf32> -> vector<8x8xf32>
    %c0_9 = arith.constant 0 : index
    %c0_10 = arith.constant 0 : index
    %10 = vector.load %arg4[%c0_9, %c0_10] : memref<1x8xf32, #tpu.memory_space<vmem>>, vector<1x8xf32>
    %11 = vector.broadcast %10 : vector<1x8xf32> to vector<8x8xf32>
    %12 = arith.addf %9, %11 : vector<8x8xf32>
    %c0_11 = arith.constant 0 : index
    %c0_12 = arith.constant 0 : index
    %13 = vector.load %arg5[%c0_11, %c0_12] : memref<8x8xf32, #tpu.memory_space<vmem>>, vector<8x8xf32>
    tpu.vector_store %arg5[%c0_11, %c0_12], %12 {strides = array<i32>} : memref<8x8xf32, #tpu.memory_space<vmem>>, vector<8x8xf32>,
    return
  }
}

</mosaic_0001>

<bundles_post_ra>
// kernel: binary_classifier_forward.1
= control target key start
LH: loop header
LB: loop body
LE: loop exit
PB: predicated region body
PF: predicated region fallthrough
CT: control target
= control target key end

     0   :  { %v310_v0 = vmov 0.0|0.0   ;;  %vm311_vm0 = vmmov 0   ;;  %v312_v4 = vmov 0.0   ;;  %vm32_vm1 = vcmask 261120   ;;  %s415_s1 = inlined_call_operand.vmem [shape: f32[32,128], index: 1, kind: input, shape index: {}]   ;;  %s416_s3 = inlined_call_operand.vmem [shape: f32[128,8], index: 3, kind: input, shape index: {}]   ;;  %s417_s0 = inlined_call_operand.vmem [shape: f32[8,32], index: 0, kind: input, shape index: {}]   ;;  %s418_s2 = inlined_call_operand.vmem [shape: f32[1,128], index: 2, kind: input, shape index: {}]   ;;  %s419_s4 = inlined_call_operand.vmem [shape: f32[1,8], index: 4, kind: input, shape index: {}]   ;;  %s420_s5 = inlined_call_operand.vmem [shape: f32[8,8], index: 5, kind: output, shape index: {}]  }
   0x1   :  { %277 = vmatprep.subr.bf16.mxu0 %v310_v0  ;;  %v21_v1 = vld [vmem:[%s415_s1] sm:$0xff]  ;;  %v22_v2 = vld [vmem:[%s415_s1 + $0x8] sm:$0xff]  ;;  %v23_v3 = vld [vmem:[%s415_s1 + $0x10] sm:$0xff]  ;;  %239 = vmatprep.mubr.msk.f32.mxu0 %vm311_vm0, %v312_v4  ;;  %vm200_vm2 = vcmask 64512  }
   0x2   :  { %v278_v5 = vpack.c.bf16 %v22_v2, %v21_v1  ;;  %v24_v6 = vld [vmem:[%s415_s1 + $0x18] sm:$0xff]  ;;  %283 = vmatprep.subr.bf16.mxu1 %v310_v0  ;;  %v107_v7 = vld [vmem:[%s416_s3] sm:$0xff]  ;;  %274 = vmatprep.mubr.msk.f32.mxu1 %vm311_vm0, %v312_v4  ;;  %v108_v8 = vld [vmem:[%s416_s3 + $0x8] sm:$0xff] }
   0x3   :  { %v109_v9 = vld [vmem:[%s416_s3 + $0x10] sm:$0xff]  ;;  %v110_v10 = vld [vmem:[%s416_s3 + $0x18] sm:$0xff]  ;;  %v281_v11 = vpack.c.bf16 %v24_v6, %v23_v3  ;;  %v284_v12 = vpack.c.bf16 %v108_v8, %v107_v7  ;;  %v111_v14 = vld [vmem:[%s416_s3 + $0x20] sm:$0xff] }
   0x4   :  { %279 = vmatpush3.bf16.msra.mxu0 %v278_v5  ;;  %v287_v13 = vpack.c.bf16 %v110_v10, %v109_v9  ;;  %v112_v15 = vld [vmem:[%s416_s3 + $0x28] sm:$0xff]  ;;  %v20_v16 = vld [vmem:[%s417_s0] sm:$0xff]  ;;  %v113_v18 = vld [vmem:[%s416_s3 + $0x30] sm:$0xff] }
   0x5   :  { %280 = vmatprep.subr.bf16.mxu0 %v310_v0  ;;  %285 = vmatpush3.bf16.msra.mxu1 %v284_v12  ;;  %v290_v17 = vpack.c.bf16 %v112_v15, %v111_v14  ;;  %v114_v19 = vld [vmem:[%s416_s3 + $0x38] sm:$0xff]  ;;  %v115_v21 = vld [vmem:[%s416_s3 + $0x40] sm:$0xff]  ;;  %v116_v22 = vld [vmem:[%s416_s3 + $0x48] sm:$0xff] }
   0x6   :  { %286 = vmatprep.subr.bf16.mxu1 %v310_v0  ;;  %v293_v20 = vpack.c.bf16 %v114_v19, %v113_v18  ;;  %v296_v23 = vpack.c.bf16 %v116_v22, %v115_v21  ;;  %v117_v24 = vld [vmem:[%s416_s3 + $0x50] sm:$0xff]  ;;  %v118_v25 = vld [vmem:[%s416_s3 + $0x58] sm:$0xff]  ;;  %v119_v27 = vld [vmem:[%s416_s3 + $0x60] sm:$0xff] }
   0x7   :  { %v299_v26 = vpack.c.bf16 %v118_v25, %v117_v24  ;;  %v120_v28 = vld [vmem:[%s416_s3 + $0x68] sm:$0xff]  ;;  %v121_v30 = vld [vmem:[%s416_s3 + $0x70] sm:$0xff]  ;;  %v122_v31 = vld [vmem:[%s416_s3 + $0x78] sm:$0xff] }
   0x8   :  { %282 = vmatpush3.bf16.msra.mxu0 %v281_v11  ;;  %v302_v29 = vpack.c.bf16 %v120_v28, %v119_v27  ;;  %v305_v32 = vpack.c.bf16 %v122_v31, %v121_v30  ;;  %v206_v33 = vld [vmem:[%s418_s2] ss:$0 sm:$0xff] }
   0x9   :  { %288 = vmatpush3.bf16.msra.mxu1 %v287_v13  ;;  %v208_v38 = vld [vmem:[%s419_s4] ss:$0 sm:$0xff] }
   0xa   :  { %289 = vmatprep.subr.bf16.mxu1 %v310_v0 }
   0xb   :  { %240 = vmatmul.mubr.msk.f32.vlgmr.msra.gmra.mrb[0].mxu0 %vm32_vm1, %v20_v16 }
   0xd   :  { %291 = vmatpush3.bf16.msra.mxu1 %v290_v17 }
   0xe   :  { %292 = vmatprep.subr.bf16.mxu1 %v310_v0 }
  0x11   :  { %294 = vmatpush3.bf16.msra.mxu1 %v293_v20 }
  0x12   :  { %295 = vmatprep.subr.bf16.mxu1 %v310_v0 }
  0x15   :  { %297 = vmatpush3.bf16.msra.mxu1 %v296_v23 }
  0x16   :  { %298 = vmatprep.subr.bf16.mxu1 %v310_v0 }
  0x19   :  { %300 = vmatpush3.bf16.msra.mxu1 %v299_v26 }
  0x1a   :  { %301 = vmatprep.subr.bf16.mxu1 %v310_v0 }
  0x1d   :  { %303 = vmatpush3.bf16.msra.mxu1 %v302_v29 }
  0x1e   :  { %304 = vmatprep.subr.bf16.mxu1 %v310_v0 }
  0x21   :  { %306 = vmatpush3.bf16.msra.mxu1 %v305_v32 }
  0xde   :  { %v102_v34 = vpop.f32.mrb[0].mxu0 }
  0xdf   :  { %v103_v35 = vadd.f32 %v206_v33, %v102_v34  ;;  %v241_v36 = vpop.f32.mrb[1].mxu0 }
  0xe1   :  { %v106_v37 = vmax.f32 %v103_v35, 0.0 }
  0xe3   :  { %275 = vmatmul.mubr.f32.vlgmr.msra.gmra.mrb[0].mxu1 %v106_v37 }
 0x1b6   :  { %v196_v39 = vpop.f32.mrb[0].mxu1 }
 0x1b7   :  { %v197_v40 = vadd.f32 %v208_v38, %v196_v39  ;;  %v276_v41 = vpop.f32.mrb[1].mxu1 }
 0x1b9   :  { %201 = vst.msk [vmem:[%s420_s5] sm:$0xff] %vm200_vm2, %v197_v40 }

</bundles_post_ra>
